<compile_context>
chip_gen: v5e
topology: v5e:2x2
jax: 0.10.0
libtpu: 0.0.40
codegen_flags: <defaults>
</compile_context>

<pallas_src>
import functools
import math

import jax
import jax.numpy as jnp
from jax import lax
from jax.experimental import pallas as pl
from jax.experimental.pallas import tpu as pltpu


def _tdap_kernel(len_ref, x_ref, out_ref, *, alpha):
    """len_ref: (TB, 1) f32 valid lengths; x_ref: (TB, L, D); out_ref: (TB, D)."""
    L = x_ref.shape[1]
    alpha_f = jnp.float32(alpha)
    log_alpha = jnp.float32(math.log(alpha))

    n = len_ref[...]                                   # (TB, 1) f32
    nonempty = n > 0.5                                 # n == 0 rows -> output zeros

    # Closed-form geometric normalizer: sum_{k=0}^{n-1} alpha^k = (1 - alpha^n)/(1 - alpha).
    alpha_pow_n = jnp.exp(n * log_alpha)               # EUP
    geo_sum = (1.0 - alpha_pow_n) / (1.0 - alpha_f)    # (TB, 1)
    inv_geo = jnp.where(nonempty,
                        1.0 / jnp.where(nonempty, geo_sum, 1.0),
                        0.0)                           # per-row only: ~free
    # base = alpha^(n-1) / geo_sum (zero for empty rows); per-step weight is then
    # w_l = base * (1/alpha)^l for l < n  (last valid step gets weight alpha^0/geo_sum).
    base = jnp.exp((n - 1.0) * log_alpha) * inv_geo    # (TB, 1)
    inv_alpha = 1.0 / float(alpha)

    acc = jnp.zeros(out_ref.shape, dtype=jnp.float32)  # (TB, D) f32 accumulator
    for l in range(L):                                 # static unroll, L <= 20: pure VPU
        w_l = jnp.where(jnp.float32(l) < n,
                        base * jnp.float32(inv_alpha ** l),
                        0.0)                           # (TB, 1)
        acc = acc + w_l * x_ref[:, l, :].astype(jnp.float32)
    out_ref[...] = acc.astype(out_ref.dtype)


def _round_up(v, m):
    return (v + m - 1) // m * m


def _choose_batch_block(B, L, D, itemsize, target_block_bytes=2 * 1024 * 1024):
    """Batch tile: multiple of 8 (sublanes); x block ~<= 2 MiB (double-buffered ~4 MiB)."""
    tb = max(1, target_block_bytes // max(1, L * D * itemsize))
    tb = max(8, (tb // 8) * 8)          # >= 8 and a multiple of 8
    tb = min(tb, 512)                   # 2 MiB blocks already amortize per-step overhead
    tb = min(tb, _round_up(B, 8))       # never bigger than the (padded) batch
    return tb


def time_decayed_avg_pool(x, mask, *, alpha=0.5, maxlen=20):
    """x: (B, L, D); mask: (B, L) binary prefix mask (1.0 on valid steps). Returns (B, D)."""
    B, L, D = x.shape
    assert mask.shape == (B, L)
    assert L <= maxlen, "PyTorch module only supports sequences up to maxlen=20"
    assert 0.0 < float(alpha) < 1.0, "closed-form normalizer assumes 0 < alpha < 1"

    # The prefix mask carries no information beyond its length; reduce it outside the
    # kernel so the dense (B, L) mask never occupies kernel DMA bandwidth.
    lengths = jnp.sum(mask.astype(jnp.float32), axis=1, keepdims=True)   # (B, 1) f32

    tb = _choose_batch_block(B, L, D, jnp.dtype(x.dtype).itemsize)
    B_pad = _round_up(B, tb)
    if B_pad != B:
        # Pad rows get length 0 -> zero output -> sliced away below. Production batch
        # sizes that are multiples of `tb` skip this copy entirely.
        x = jnp.pad(x, ((0, B_pad - B), (0, 0), (0, 0)))
        lengths = jnp.pad(lengths, ((0, B_pad - B), (0, 0)))

    kernel = functools.partial(_tdap_kernel, alpha=float(alpha))
    out = pl.pallas_call(
        kernel,
        out_shape=jax.ShapeDtypeStruct((B_pad, D), x.dtype),
        grid=(B_pad // tb,),
        in_specs=[
            pl.BlockSpec((tb, 1), lambda i: (i, 0)),        # per-row lengths (tiny)
            pl.BlockSpec((tb, L, D), lambda i: (i, 0, 0)),  # L, D untiled
        ],
        out_specs=pl.BlockSpec((tb, D), lambda i: (i, 0)),
        compiler_params=pltpu.CompilerParams(
            dimension_semantics=("parallel",),              # megacore shards the batch loop
        ),
    )(lengths, x)
    return out[:B]


def _reference(x, mask, alpha=0.5, maxlen=20):
    """Pure-JAX reference mirroring the PyTorch loop."""
    B, L, D = x.shape
    base = jnp.array([alpha ** (maxlen - i - 1) for i in range(maxlen)],
                     dtype=jnp.float32)
    outs = []
    for i in range(B):
        sqlen = int(jnp.sum(mask[i]))
        w = base[maxlen - sqlen:]
        w = w / jnp.sum(w)
        outs.append(w[None, :] @ x[i, :sqlen, :])
    return jnp.concatenate(outs, axis=0)


if __name__ == "__main__":
    key = jax.random.PRNGKey(0)
    B, L, D = 2, 8, 32          # batch, seq (<= maxlen=20), hidden
    alpha = 0.5

    kx, _ = jax.random.split(key)
    x = jax.random.normal(kx, (B, L, D), dtype=jnp.float32)

    # prefix-valid binary mask: lengths [5, 8]
    lengths = jnp.array([5, 8], dtype=jnp.int32)
    mask = (lax.broadcasted_iota(jnp.int32, (B, L), 1)
            < lengths[:, None]).astype(jnp.float32)

    out = time_decayed_avg_pool(x, mask, alpha=alpha)
    out = jax.block_until_ready(out)

    ref = _reference(x, mask, alpha=alpha)
    assert out.shape == (B, D)
    assert jnp.allclose(out, ref, atol=1e-4, rtol=1e-4), "mismatch vs reference"

    print("KERNEL_OK")
</pallas_src>

<mosaic_0001>
module attributes {stable_mosaic.version = 11 : i64} {
  func.func @_tdap_kernel(%arg0: i32, %arg1: memref<8x1xf32, #tpu.memory_space<vmem>>, %arg2: memref<8x8x32xf32, #tpu.memory_space<vmem>>, %arg3: memref<8x32xf32, #tpu.memory_space<vmem>>) attributes {dimension_semantics = [#tpu.dimension_semantics<parallel>], iteration_bounds = array<i64: 1>, scalar_prefetch = 0 : i64, scratch_operands = 0 : i64, tpu.core_type = #tpu.core_type<tc>, window_params = [{transform_indices = @transform_0, window_bounds = array<i64: 8, 1>}, {transform_indices = @transform_1, window_bounds = array<i64: 8, 8, 32>}, {transform_indices = @transform_2, window_bounds = array<i64: 8, 32>}]} {
    %c0 = arith.constant 0 : index
    %c0_0 = arith.constant 0 : index
    %0 = vector.load %arg1[%c0, %c0_0] : memref<8x1xf32, #tpu.memory_space<vmem>>, vector<8x1xf32>
    %cst = arith.constant 5.000000e-01 : f32
    %1 = vector.broadcast %cst : f32 to vector<8x1xf32>
    %2 = arith.cmpf ogt, %0, %1 : vector<8x1xf32>
    %cst_1 = arith.constant -0.693147182 : f32
    %3 = vector.broadcast %cst_1 : f32 to vector<8x1xf32>
    %4 = arith.mulf %0, %3 : vector<8x1xf32>
    %5 = math.exp %4 : vector<8x1xf32>
    %cst_2 = arith.constant 1.000000e+00 : f32
    %6 = vector.broadcast %cst_2 : f32 to vector<8x1xf32>
    %7 = arith.subf %6, %5 : vector<8x1xf32>
    %cst_3 = arith.constant 1.000000e+00 : f32
    %cst_4 = arith.constant 5.000000e-01 : f32
    %8 = arith.subf %cst_3, %cst_4 : f32
    %9 = vector.broadcast %8 : f32 to vector<8x1xf32>
    %10 = arith.divf %7, %9 : vector<8x1xf32>
    %cst_5 = arith.constant 1.000000e+00 : f32
    %11 = vector.broadcast %cst_5 : f32 to vector<8x1xf32>
    %12 = arith.select %2, %10, %11 : vector<8x1xi1>, vector<8x1xf32>
    %cst_6 = arith.constant 1.000000e+00 : f32
    %13 = vector.broadcast %cst_6 : f32 to vector<8x1xf32>
    %14 = arith.divf %13, %12 : vector<8x1xf32>
    %cst_7 = arith.constant 0.000000e+00 : f32
    %15 = vector.broadcast %cst_7 : f32 to vector<8x1xf32>
    %16 = arith.select %2, %14, %15 : vector<8x1xi1>, vector<8x1xf32>
    %cst_8 = arith.constant 1.000000e+00 : f32
    %17 = vector.broadcast %cst_8 : f32 to vector<8x1xf32>
    %18 = arith.subf %0, %17 : vector<8x1xf32>
    %cst_9 = arith.constant -0.693147182 : f32
    %19 = vector.broadcast %cst_9 : f32 to vector<8x1xf32>
    %20 = arith.mulf %18, %19 : vector<8x1xf32>
    %21 = math.exp %20 : vector<8x1xf32>
    %22 = arith.mulf %21, %16 : vector<8x1xf32>
    %cst_10 = arith.constant 0.000000e+00 : f32
    %23 = vector.broadcast %cst_10 : f32 to vector<8x32xf32>
    %cst_11 = arith.constant 0.000000e+00 : f32
    %24 = vector.broadcast %cst_11 : f32 to vector<8x1xf32>
    %25 = arith.cmpf olt, %24, %0 : vector<8x1xf32>
    %cst_12 = arith.constant 1.000000e+00 : f32
    %26 = vector.broadcast %cst_12 : f32 to vector<8x1xf32>
    %27 = arith.mulf %22, %26 : vector<8x1xf32>
    %cst_13 = arith.constant 0.000000e+00 : f32
    %28 = vector.broadcast %cst_13 : f32 to vector<8x1xf32>
    %29 = arith.select %25, %27, %28 : vector<8x1xi1>, vector<8x1xf32>
    %c0_14 = arith.constant 0 : index
    %c0_15 = arith.constant 0 : index
    %c0_16 = arith.constant 0 : index
    %30 = vector.load %arg2[%c0_14, %c0_15, %c0_16] : memref<8x8x32xf32, #tpu.memory_space<vmem>>, vector<8x1x32xf32>
    %31 = vector.shape_cast %30 : vector<8x1x32xf32> to vector<8x32xf32>
    %32 = vector.broadcast %29 : vector<8x1xf32> to vector<8x32xf32>
    %33 = arith.mulf %32, %31 : vector<8x32xf32>
    %34 = arith.addf %23, %33 : vector<8x32xf32>
    %cst_17 = arith.constant 1.000000e+00 : f32
    %35 = vector.broadcast %cst_17 : f32 to vector<8x1xf32>
    %36 = arith.cmpf olt, %35, %0 : vector<8x1xf32>
    %cst_18 = arith.constant 2.000000e+00 : f32
    %37 = vector.broadcast %cst_18 : f32 to vector<8x1xf32>
    %38 = arith.mulf %22, %37 : vector<8x1xf32>
    %cst_19 = arith.constant 0.000000e+00 : f32
    %39 = vector.broadcast %cst_19 : f32 to vector<8x1xf32>
    %40 = arith.select %36, %38, %39 : vector<8x1xi1>, vector<8x1xf32>
    %c0_20 = arith.constant 0 : index
    %c1 = arith.constant 1 : index
    %c0_21 = arith.constant 0 : index
    %41 = vector.load %arg2[%c0_20, %c1, %c0_21] : memref<8x8x32xf32, #tpu.memory_space<vmem>>, vector<8x1x32xf32>
    %42 = vector.shape_cast %41 : vector<8x1x32xf32> to vector<8x32xf32>
    %43 = vector.broadcast %40 : vector<8x1xf32> to vector<8x32xf32>
    %44 = arith.mulf %43, %42 : vector<8x32xf32>
    %45 = arith.addf %34, %44 : vector<8x32xf32>
    %cst_22 = arith.constant 2.000000e+00 : f32
    %46 = vector.broadcast %cst_22 : f32 to vector<8x1xf32>
    %47 = arith.cmpf olt, %46, %0 : vector<8x1xf32>
    %cst_23 = arith.constant 4.000000e+00 : f32
    %48 = vector.broadcast %cst_23 : f32 to vector<8x1xf32>
    %49 = arith.mulf %22, %48 : vector<8x1xf32>
    %cst_24 = arith.constant 0.000000e+00 : f32
    %50 = vector.broadcast %cst_24 : f32 to vector<8x1xf32>
    %51 = arith.select %47, %49, %50 : vector<8x1xi1>, vector<8x1xf32>
    %c0_25 = arith.constant 0 : index
    %c2 = arith.constant 2 : index
    %c0_26 = arith.constant 0 : index
    %52 = vector.load %arg2[%c0_25, %c2, %c0_26] : memref<8x8x32xf32, #tpu.memory_space<vmem>>, vector<8x1x32xf32>
    %53 = vector.shape_cast %52 : vector<8x1x32xf32> to vector<8x32xf32>
    %54 = vector.broadcast %51 : vector<8x1xf32> to vector<8x32xf32>
    %55 = arith.mulf %54, %53 : vector<8x32xf32>
    %56 = arith.addf %45, %55 : vector<8x32xf32>
    %cst_27 = arith.constant 3.000000e+00 : f32
    %57 = vector.broadcast %cst_27 : f32 to vector<8x1xf32>
    %58 = arith.cmpf olt, %57, %0 : vector<8x1xf32>
    %cst_28 = arith.constant 8.000000e+00 : f32
    %59 = vector.broadcast %cst_28 : f32 to vector<8x1xf32>
    %60 = arith.mulf %22, %59 : vector<8x1xf32>
    %cst_29 = arith.constant 0.000000e+00 : f32
    %61 = vector.broadcast %cst_29 : f32 to vector<8x1xf32>
    %62 = arith.select %58, %60, %61 : vector<8x1xi1>, vector<8x1xf32>
    %c0_30 = arith.constant 0 : index
    %c3 = arith.constant 3 : index
    %c0_31 = arith.constant 0 : index
    %63 = vector.load %arg2[%c0_30, %c3, %c0_31] : memref<8x8x32xf32, #tpu.memory_space<vmem>>, vector<8x1x32xf32>
    %64 = vector.shape_cast %63 : vector<8x1x32xf32> to vector<8x32xf32>
    %65 = vector.broadcast %62 : vector<8x1xf32> to vector<8x32xf32>
    %66 = arith.mulf %65, %64 : vector<8x32xf32>
    %67 = arith.addf %56, %66 : vector<8x32xf32>
    %cst_32 = arith.constant 4.000000e+00 : f32
    %68 = vector.broadcast %cst_32 : f32 to vector<8x1xf32>
    %69 = arith.cmpf olt, %68, %0 : vector<8x1xf32>
    %cst_33 = arith.constant 1.600000e+01 : f32
    %70 = vector.broadcast %cst_33 : f32 to vector<8x1xf32>
    %71 = arith.mulf %22, %70 : vector<8x1xf32>
    %cst_34 = arith.constant 0.000000e+00 : f32
    %72 = vector.broadcast %cst_34 : f32 to vector<8x1xf32>
    %73 = arith.select %69, %71, %72 : vector<8x1xi1>, vector<8x1xf32>
    %c0_35 = arith.constant 0 : index
    %c4 = arith.constant 4 : index
    %c0_36 = arith.constant 0 : index
    %74 = vector.load %arg2[%c0_35, %c4, %c0_36] : memref<8x8x32xf32, #tpu.memory_space<vmem>>, vector<8x1x32xf32>
    %75 = vector.shape_cast %74 : vector<8x1x32xf32> to vector<8x32xf32>
    %76 = vector.broadcast %73 : vector<8x1xf32> to vector<8x32xf32>
    %77 = arith.mulf %76, %75 : vector<8x32xf32>
    %78 = arith.addf %67, %77 : vector<8x32xf32>
    %cst_37 = arith.constant 5.000000e+00 : f32
    %79 = vector.broadcast %cst_37 : f32 to vector<8x1xf32>
    %80 = arith.cmpf olt, %79, %0 : vector<8x1xf32>
    %cst_38 = arith.constant 3.200000e+01 : f32
    %81 = vector.broadcast %cst_38 : f32 to vector<8x1xf32>
    %82 = arith.mulf %22, %81 : vector<8x1xf32>
    %cst_39 = arith.constant 0.000000e+00 : f32
    %83 = vector.broadcast %cst_39 : f32 to vector<8x1xf32>
    %84 = arith.select %80, %82, %83 : vector<8x1xi1>, vector<8x1xf32>
    %c0_40 = arith.constant 0 : index
    %c5 = arith.constant 5 : index
    %c0_41 = arith.constant 0 : index
    %85 = vector.load %arg2[%c0_40, %c5, %c0_41] : memref<8x8x32xf32, #tpu.memory_space<vmem>>, vector<8x1x32xf32>
    %86 = vector.shape_cast %85 : vector<8x1x32xf32> to vector<8x32xf32>
    %87 = vector.broadcast %84 : vector<8x1xf32> to vector<8x32xf32>
    %88 = arith.mulf %87, %86 : vector<8x32xf32>
    %89 = arith.addf %78, %88 : vector<8x32xf32>
    %cst_42 = arith.constant 6.000000e+00 : f32
    %90 = vector.broadcast %cst_42 : f32 to vector<8x1xf32>
    %91 = arith.cmpf olt, %90, %0 : vector<8x1xf32>
    %cst_43 = arith.constant 6.400000e+01 : f32
    %92 = vector.broadcast %cst_43 : f32 to vector<8x1xf32>
    %93 = arith.mulf %22, %92 : vector<8x1xf32>
    %cst_44 = arith.constant 0.000000e+00 : f32
    %94 = vector.broadcast %cst_44 : f32 to vector<8x1xf32>
    %95 = arith.select %91, %93, %94 : vector<8x1xi1>, vector<8x1xf32>
    %c0_45 = arith.constant 0 : index
    %c6 = arith.constant 6 : index
    %c0_46 = arith.constant 0 : index
    %96 = vector.load %arg2[%c0_45, %c6, %c0_46] : memref<8x8x32xf32, #tpu.memory_space<vmem>>, vector<8x1x32xf32>
    %97 = vector.shape_cast %96 : vector<8x1x32xf32> to vector<8x32xf32>
    %98 = vector.broadcast %95 : vector<8x1xf32> to vector<8x32xf32>
    %99 = arith.mulf %98, %97 : vector<8x32xf32>
    %100 = arith.addf %89, %99 : vector<8x32xf32>
    %cst_47 = arith.constant 7.000000e+00 : f32
    %101 = vector.broadcast %cst_47 : f32 to vector<8x1xf32>
    %102 = arith.cmpf olt, %101, %0 : vector<8x1xf32>
    %cst_48 = arith.constant 1.280000e+02 : f32
    %103 = vector.broadcast %cst_48 : f32 to vector<8x1xf32>
    %104 = arith.mulf %22, %103 : vector<8x1xf32>
    %cst_49 = arith.constant 0.000000e+00 : f32
    %105 = vector.broadcast %cst_49 : f32 to vector<8x1xf32>
    %106 = arith.select %102, %104, %105 : vector<8x1xi1>, vector<8x1xf32>
    %c0_50 = arith.constant 0 : index
    %c7 = arith.constant 7 : index
    %c0_51 = arith.constant 0 : index
    %107 = vector.load %arg2[%c0_50, %c7, %c0_51] : memref<8x8x32xf32, #tpu.memory_space<vmem>>, vector<8x1x32xf32>
    %108 = vector.shape_cast %107 : vector<8x1x32xf32> to vector<8x32xf32>
    %109 = vector.broadcast %106 : vector<8x1xf32> to vector<8x32xf32>
    %110 = arith.mulf %109, %108 : vector<8x32xf32>
    %111 = arith.addf %100, %110 : vector<8x32xf32>
    %c0_52 = arith.constant 0 : index
    %c0_53 = arith.constant 0 : index
    %112 = vector.load %arg3[%c0_52, %c0_53] : memref<8x32xf32, #tpu.memory_space<vmem>>, vector<8x32xf32>
    tpu.vector_store %arg3[%c0_52, %c0_53], %111 {strides = array<i32>} : memref<8x32xf32, #tpu.memory_space<vmem>>, vector<8x32xf32>,
    return
  }
  func.func @transform_0(%arg0: i32) -> (i32, i32) {
    %c0_i32 = arith.constant 0 : i32
    %c0_i32_0 = arith.constant 0 : i32
    return %arg0, %c0_i32 : i32, i32
  }
  func.func @transform_1(%arg0: i32) -> (i32, i32, i32) {
    %c0_i32 = arith.constant 0 : i32
    %c0_i32_0 = arith.constant 0 : i32
    %c0_i32_1 = arith.constant 0 : i32
    return %arg0, %c0_i32, %c0_i32_0 : i32, i32, i32
  }
  func.func @transform_2(%arg0: i32) -> (i32, i32) {
    %c0_i32 = arith.constant 0 : i32
    %c0_i32_0 = arith.constant 0 : i32
    return %arg0, %c0_i32 : i32, i32
  }
}

</mosaic_0001>

<bundles_post_ra>
// kernel: tpu_custom_call.1
= control target key start
LH: loop header
LB: loop body
LE: loop exit
PB: predicated region body
PF: predicated region fallthrough
CT: control target
= control target key end

     0   :  { %7 = vsyncpa [#allocation3], 0  ;;  %s616_s0 = inlined_call_operand.vmem [shape: f32[8,1], index: 0, kind: input, shape index: {}]   ;;  %s617_s1 = inlined_call_operand.hbm [shape: f32[8,8,32], index: 1, kind: input, shape index: {}]   ;;  %s618_s2 = inlined_call_operand.hbm [shape: f32[8,32], index: 2, kind: output, shape index: {}]  }
   0x1   :  { %8 = vsyncpa [#allocation4], 0  ;;  %s15_s11 = sshll.u32 %s617_s1, 4  ;;  %s495_s12 = smov [#allocation2]   ;;  %s16_s11 = int_to_ptr.hbm [resolvable:$true] %s15_s11 }
   0x2   :  { %s17_s13 = sshll.u32 %s495_s12, 4  ;;  %s496_s14 = smov 128   ;;  %s18_s13 = int_to_ptr.vmem [resolvable:$true] %s17_s13 }
   0x3   :  { %s497_s15 = smov 8  }
   0x4   :  { %23 = dma.hbm_to_vmem [thread:$0]  %s16_s11, 1024, %s18_s13, [#allocation3], %s496_s14, %s496_s14, %s497_s15  }
   0x5   :  { %491 = dma.done.wait [#allocation3], 1024  }
   0x6   :  { %492 = vsyncadd [#allocation3], 4294966272  ;;  %v498_v0 = vmov 0   ;;  %v499_v1 = vmov 0.5   ;;  %v522_v3 = vld [vmem:[%s616_s0] sm:$0xff]  ;;  %vm88_vm14 = vcmask 1041409  }
   0x7   :  { %432 = vset.pattern.permute.xlu0 %v498_v0  ;;  %435 = vrcp.f32 %v499_v1  ;;  %433 = vset.pattern.permute.xlu1 %v498_v0  ;;  %v30_v4 = vmul.f32 -0.6931472, %v522_v3  ;;  %vm29_vm1 = vcmp.gt.f32.partialorder %v522_v3, 0.5  ;;  %v417_v13 = vadd.f32 -1.0, %v522_v3  ;;  %v238_v46 = vld [vmem:[#allocation2 + $0xc] sm:$0x1] }
   0x8   :  { %434 = vset.pattern.permute.xlu2 %v498_v0  ;;  %vm418_vm6 = vcmp.gt.f32.partialorder %v522_v3, 0.0  ;;  %vm420_vm7 = vcmp.gt.f32.partialorder %v522_v3, 2.0  ;;  %vm422_vm8 = vcmp.gt.f32.partialorder %v522_v3, 4.0  ;;  %vm419_vm9 = vcmp.gt.f32.partialorder %v522_v3, 1.0  ;;  %v67_v47 = vld [vmem:[#allocation2 + $0x8] sm:$0x1] }
   0x9   :  { %v31_v6 = vmul.f32 1.442695, %v30_v4  ;;  %v60_v16 = vmul.f32 -0.6931472, %v417_v13  ;;  %vm421_vm10 = vcmp.gt.f32.partialorder %v522_v3, 3.0  ;;  %vm423_vm11 = vcmp.gt.f32.partialorder %v522_v3, 5.0 }
   0xa   :  { %vm424_vm12 = vcmp.gt.f32.partialorder %v522_v3, 6.0  ;;  %vm425_vm13 = vcmp.gt.f32.partialorder %v522_v3, 7.0  ;;  %v239_v48 = vld [vmem:[#allocation2 + $0x14] sm:$0x1]  ;;  %v258_v49 = vrot.slane %v238_v46, 7  ;;  %v87_v52 = vrot.slane %v67_v47, 7 }
   0xb   :  { %437 = vpow2.f32 %v31_v6  ;;  %v61_v17 = vmul.f32 1.442695, %v60_v16  ;;  %v237_v50 = vld [vmem:[#allocation2 + $0x4] sm:$0x1]  ;;  %v68_v51 = vld [vmem:[#allocation2 + $0x10] sm:$0x1] }
   0xc   :  { %v240_v53 = vld [vmem:[#allocation2 + $0x1c] sm:$0x1]  ;;  %v241_v54 = vld [vmem:[#allocation2 + $0x24] sm:$0x1]  ;;  %v66_v55 = vld [vmem:[#allocation2] sm:$0x1]  ;;  %v259_v59 = vsel %vm88_vm14, %v258_v49, %v237_v50 }
   0xd   :  { %v436_v2 = vpop.eup %435  ;;  %vm91_vm15 = vcmask 1042434   ;;  %v539_v56 = vld [vmem:[#allocation2 + $0x2c] sm:$0x1]  ;;  %v541_v57 = vld [vmem:[#allocation2 + $0x34] sm:$0x1]  ;;  %v260_v58 = vrot.slane %v239_v48, 6  ;;  %v89_v1 = vsel %vm88_vm14, %v87_v52, %v66_v55 }
   0xe   :  { %v35_v5 = vmul.f32 0.5, %v436_v2  ;;  %vm39_vm0 = vweird.f32 %v436_v2  ;;  %v69_v60 = vld [vmem:[#allocation2 + $0x18] sm:$0x1]  ;;  %v90_v61 = vrot.slane %v68_v51, 6  ;;  %v115_v62 = vld [vmem:[#allocation2 + $0x9] sm:$0x1] }
   0xf   :  { %v262_v63 = vrot.slane %v240_v53, 5  ;;  %v264_v0 = vrot.slane %v241_v54, 4  ;;  %v268_v3 = vrot.slane %v541_v57, 2  ;;  %v70_v4 = vld [vmem:[#allocation2 + $0x20] sm:$0x1]  ;;  %v261_v6 = vsel %vm91_vm15, %v260_v58, %v259_v59  ;;  %s500_s0 = smov [#allocation5]  }
  0x10   :  { %v36_v7 = vsub.f32 1.0, %v35_v5  ;;  %v156_v5 = vld [vmem:[#allocation2 + $0xa] sm:$0x1]  ;;  %v114_v13 = vld [vmem:[#allocation2 + $0x1] sm:$0x1]  ;;  %s405_s1 = sshll.u32 %s500_s0, 4  ;;  %s406_s1 = int_to_ptr.vmem [resolvable:$true] %s405_s1 }
  0x11   :  { %v438_v10 = vpop.eup %437  ;;  %v549_v16 = vld [vmem:[#allocation2 + $0x38] sm:$0x1]  ;;  %v278_v47 = vld [vmem:[#allocation2 + $0x5] sm:$0x1]  ;;  %v160_v50 = vld [vmem:[#allocation2 + $0x2a] sm:$0x1] }
  0x12   :  { %v37_v8 = vmul.f32 %v436_v2, %v36_v7  ;;  %v33_v12 = vsub.f32 1.0, %v438_v10  ;;  %v71_v7 = vld [vmem:[#allocation2 + $0x28] sm:$0x1]  ;;  %v135_v10 = vrot.slane %v115_v62, 7  ;;  %v119_v53 = vld [vmem:[#allocation2 + $0x29] sm:$0x1] }
  0x13   :  { %v361_v55 = vld [vmem:[#allocation2 + $0xf] sm:$0x1]  ;;  %v321_v62 = vld [vmem:[#allocation2 + $0x16] sm:$0x1]  ;;  %s407_s20 = sshll.u32 %s618_s2, 4  ;;  %s408_s20 = int_to_ptr.hbm [resolvable:$true] %s407_s20 }
  0x14   :  { %v38_v9 = vadd.f32 %v436_v2, %v37_v8  ;;  %v93_v8 = vrot.slane %v69_v60, 5  ;;  %v200_v60 = vld [vmem:[#allocation2 + $0x23] sm:$0x1] }
  0x16   :  { %v40_v11 = vsel %vm39_vm0, %v436_v2, %v38_v9  ;;  %vm94_vm0 = vcmask 1043459   ;;  %v266_v2 = vrot.slane %v539_v56, 3  ;;  %v116_v9 = vld [vmem:[#allocation2 + $0x11] sm:$0x1] }
  0x17   :  { %v41_v14 = vmul.f32 %v40_v11, %v33_v12  ;;  %v92_v11 = vsel %vm91_vm15, %v90_v61, %v89_v1  ;;  %v157_v12 = vld [vmem:[#allocation2 + $0x12] sm:$0x1]  ;;  %v281_v1 = vld [vmem:[#allocation2 + $0x1d] sm:$0x1] }
  0x19   :  { %v42_v15 = vsel %vm29_vm1, %v41_v14, 1.0  ;;  %v197_v14 = vld [vmem:[#allocation2 + $0xb] sm:$0x1] }
  0x1a   :  { %439 = vrcp.f32 %v42_v15  ;;  %v54_v20 = vand.u32 2147483648, %v42_v15  ;;  %vm48_vm2 = vweird.f32 %v42_v15  ;;  %v52_v22 = vand.u32 2147483647, %v42_v15 }
  0x1b   :  { %441 = vpow2.f32 %v61_v17  ;;  %v96_v17 = vrot.slane %v70_v4, 4  ;;  %v120_v4 = vld [vmem:[#allocation2 + $0x31] sm:$0x1] }
  0x1c   :  { %v55_v24 = vor.u32 1.1754944e-38, %v54_v20  ;;  %vm53_vm5 = vcmp.eq.f32.partialorder %v52_v22, 8.507059e+37  ;;  %v99_v20 = vrot.slane %v71_v7, 3  ;;  %v117_v22 = vld [vmem:[#allocation2 + $0x19] sm:$0x1] }
  0x20   :  { %v440_v18 = vpop.eup %439 }
  0x21   :  { %v44_v19 = vmul.f32 %v440_v18, %v42_v15  ;;  %vm49_vm3 = vweird.f32 %v440_v18  ;;  %v442_v26 = vpop.eup %441  ;;  %v72_v15 = vld [vmem:[#allocation2 + $0x30] sm:$0x1] }
  0x22   :  { %vm50_vm4 = vmor %vm48_vm2, %vm49_vm3  ;;  %vm100_vm2 = vcmask 1045509   ;;  %vm103_vm3 = vcmask 1046534  }
  0x23   :  { %v45_v21 = vsub.f32 1.0, %v44_v19  ;;  %v263_v19 = vsel %vm94_vm0, %v262_v63, %v261_v6  ;;  %v319_v6 = vld [vmem:[#allocation2 + $0x6] sm:$0x1] }
  0x25   :  { %v46_v23 = vmul.f32 %v440_v18, %v45_v21  ;;  %v155_v21 = vld [vmem:[#allocation2 + $0x2] sm:$0x1] }
  0x27   :  { %v47_v25 = vadd.f32 %v440_v18, %v46_v23  ;;  %v137_v23 = vrot.slane %v116_v9, 6  ;;  %v143_v9 = vrot.slane %v119_v53, 3  ;;  %v324_v53 = vld [vmem:[#allocation2 + $0x2e] sm:$0x1] }
  0x29   :  { %v51_v27 = vsel %vm50_vm4, %v440_v18, %v47_v25  ;;  %v176_v18 = vrot.slane %v156_v5, 7  ;;  %v158_v25 = vld [vmem:[#allocation2 + $0x1a] sm:$0x1]  ;;  %vm106_vm4 = vcmask 1047559  }
  0x2a   :  { %v56_v28 = vsel %vm53_vm5, %v55_v24, %v51_v27  ;;  %v95_v24 = vsel %vm94_vm0, %v93_v8, %v92_v11  ;;  %v136_v27 = vsel %vm88_vm14, %v135_v10, %v114_v13  ;;  %v201_v10 = vld [vmem:[#allocation2 + $0x2b] sm:$0x1]  ;;  %v362_v11 = vld [vmem:[#allocation2 + $0x17] sm:$0x1]  ;;  %vm398_vm5 = vcmask 261120  }
  0x2b   :  { %v58_v29 = vsel %vm29_vm1, %v56_v28, 0.0  ;;  %vm97_vm1 = vcmask 1044484   ;;  %v198_v28 = vld [vmem:[#allocation2 + $0x13] sm:$0x1] }
  0x2c   :  { %v63_v30 = vmul.f32 %v442_v26, %v58_v29  ;;  %v178_v26 = vrot.slane %v157_v12, 6  ;;  %v217_v29 = vrot.slane %v197_v14, 7  ;;  %v381_v12 = vrot.slane %v361_v55, 7 }
  0x2d   :  { %v223_v14 = vrot.slane %v200_v60, 4 }
  0x2e   :  { %v65_v31 = vsel %vm418_vm6, %v63_v30, 0.0  ;;  %v153_v32 = vmul.f32 4.0, %v63_v30  ;;  %v235_v33 = vmul.f32 16.0, %v63_v30  ;;  %v112_v35 = vmul.f32 2.0, %v63_v30 }
  0x2f   :  { %76 = vperm.xlu0 %432, %v65_v31   ;;  %v194_v37 = vmul.f32 8.0, %v63_v30  ;;  %v276_v38 = vmul.f32 32.0, %v63_v30  ;;  %v317_v42 = vmul.f32 64.0, %v63_v30  ;;  %v358_v43 = vmul.f32 128.0, %v63_v30  ;;  %v159_v30 = vld [vmem:[#allocation2 + $0x22] sm:$0x1] }
  0x30   :  { %v154_v34 = vsel %vm420_vm7, %v153_v32, 0.0  ;;  %v236_v36 = vsel %vm422_vm8, %v235_v33, 0.0  ;;  %v113_v39 = vsel %vm419_vm9, %v112_v35, 0.0  ;;  %v279_v31 = vld [vmem:[#allocation2 + $0xd] sm:$0x1]  ;;  %v265_v33 = vsel %vm97_vm1, %v264_v0, %v263_v19 }
  0x31   :  { %165 = vperm.xlu1 %433, %v154_v34   ;;  %247 = vperm.xlu2 %434, %v236_v36   ;;  %v195_v40 = vsel %vm421_vm10, %v194_v37, 0.0  ;;  %v277_v41 = vsel %vm423_vm11, %v276_v38, 0.0  ;;  %v318_v44 = vsel %vm424_vm12, %v317_v42, 0.0  ;;  %v359_v45 = vsel %vm425_vm13, %v358_v43, 0.0  ;;  %v196_v32 = vld [vmem:[#allocation2 + $0x3] sm:$0x1] }
  0x32   :  { %v102_v34 = vrot.slane %v72_v15, 2  ;;  %v177_v35 = vsel %vm88_vm14, %v176_v18, %v155_v21  ;;  %v280_v36 = vld [vmem:[#allocation2 + $0x15] sm:$0x1]  ;;  %v118_v37 = vld [vmem:[#allocation2 + $0x21] sm:$0x1]  ;;  %v139_v38 = vrot.slane %v117_v22, 5  ;;  %v218_v49 = vsel %vm88_vm14, %v217_v29, %v196_v32 }
  0x33   :  { %v199_v42 = vld [vmem:[#allocation2 + $0x1b] sm:$0x1]  ;;  %v219_v43 = vrot.slane %v198_v28, 6  ;;  %v182_v46 = vrot.slane %v159_v30, 4  ;;  %v299_v48 = vrot.slane %v279_v31, 7  ;;  %v179_v51 = vsel %vm91_vm15, %v178_v26, %v177_v35 }
  0x34   :  { %v301_v52 = vrot.slane %v280_v36, 6  ;;  %v141_v54 = vrot.slane %v118_v37, 4  ;;  %v221_v61 = vrot.slane %v199_v42, 5  ;;  %v566_v0 = vsel %vm100_vm2, %v266_v2, %v265_v33  ;;  %v322_v2 = vld [vmem:[#allocation2 + $0x1e] sm:$0x1] }
  0x35   :  { %v220_v5 = vsel %vm91_vm15, %v219_v43, %v218_v49  ;;  %v300_v8 = vsel %vm88_vm14, %v299_v48, %v278_v47  ;;  %v342_v15 = vrot.slane %v321_v62, 6  ;;  %v161_v18 = vld [vmem:[#allocation2 + $0x32] sm:$0x1]  ;;  %v184_v19 = vrot.slane %v160_v50, 3  ;;  %v121_v26 = vld [vmem:[#allocation2 + $0x39] sm:$0x1] }
  0x36   :  { %v303_v21 = vrot.slane %v281_v1, 5  ;;  %v222_v22 = vsel %vm94_vm0, %v221_v61, %v220_v5  ;;  %v363_v28 = vld [vmem:[#allocation2 + $0x1f] sm:$0x1]  ;;  %v383_v29 = vrot.slane %v362_v11, 6  ;;  %v202_v32 = vld [vmem:[#allocation2 + $0x33] sm:$0x1] }
  0x37   :  { %124 = vperm.xlu0 %432, %v113_v39   ;;  %v98_v39 = vsel %vm97_vm1, %v96_v17, %v95_v24  ;;  %v360_v17 = vld [vmem:[#allocation2 + $0x7] sm:$0x1]  ;;  %v225_v33 = vrot.slane %v201_v10, 3  ;;  %v344_v35 = vrot.slane %v322_v2, 5  ;;  %v162_v37 = vld [vmem:[#allocation2 + $0x3a] sm:$0x1]  ;;  %v224_v42 = vsel %vm97_vm1, %v223_v14, %v222_v22 }
  0x38   :  { %v101_v58 = vsel %vm100_vm2, %v99_v20, %v98_v39  ;;  %v282_v20 = vld [vmem:[#allocation2 + $0x25] sm:$0x1]  ;;  %v382_v36 = vsel %vm88_vm14, %v381_v12, %v360_v17  ;;  %v283_v39 = vld [vmem:[#allocation2 + $0x2d] sm:$0x1]  ;;  %v147_v47 = vrot.slane %v121_v26, 1  ;;  %v385_v49 = vrot.slane %v363_v28, 5 }
  0x39   :  { %206 = vperm.xlu1 %433, %v195_v40   ;;  %288 = vperm.xlu2 %434, %v277_v41   ;;  %v105_v40 = vrot.slane %v549_v16, 1  ;;  %v138_v41 = vsel %vm91_vm15, %v137_v23, %v136_v27  ;;  %v104_v13 = vsel %vm103_vm3, %v102_v34, %v101_v58  ;;  %v145_v27 = vrot.slane %v120_v4, 2  ;;  %v323_v34 = vld [vmem:[#allocation2 + $0x26] sm:$0x1]  ;;  %v364_v48 = vld [vmem:[#allocation2 + $0x27] sm:$0x1] }
  0x3a   :  { %v140_v59 = vsel %vm94_vm0, %v139_v38, %v138_v41  ;;  %v186_v38 = vrot.slane %v161_v18, 2  ;;  %v305_v41 = vrot.slane %v282_v20, 4  ;;  %v384_v55 = vsel %vm91_vm15, %v383_v29, %v382_v36  ;;  %v244_v58 = vld [vmem:[#allocation2 + $0x3c] sm:$0x1]  ;;  %v284_v61 = vld [vmem:[#allocation2 + $0x35] sm:$0x1] }
  0x3b   :  { %v142_v56 = vsel %vm97_vm1, %v141_v54, %v140_v59  ;;  %v346_v54 = vrot.slane %v323_v34, 4  ;;  %v188_v60 = vrot.slane %v162_v37, 1  ;;  %v307_v62 = vrot.slane %v283_v39, 3  ;;  %v325_v11 = vld [vmem:[#allocation2 + $0x36] sm:$0x1] }
  0x3c   :  { %v144_v31 = vsel %vm100_vm2, %v143_v9, %v142_v56  ;;  %v107_v4 = vsel %vm106_vm4, %v105_v40, %v104_v13  ;;  %v348_v12 = vrot.slane %v324_v53, 3  ;;  %v386_v56 = vsel %vm94_vm0, %v385_v49, %v384_v55  ;;  %v285_v2 = vld [vmem:[#allocation2 + $0x3d] sm:$0x1]  ;;  %v366_v20 = vld [vmem:[#allocation2 + $0x37] sm:$0x1] }
  0x3d   :  { %v146_v50 = vsel %vm103_vm3, %v145_v27, %v144_v31  ;;  %v270_v14 = vrot.slane %v244_v58, 1  ;;  %v269_v13 = vsel %vm103_vm3, %v268_v3, %v566_v0  ;;  %v311_v27 = vrot.slane %v285_v2, 1 }
  0x3e   :  { %v148_v9 = vsel %vm106_vm4, %v147_v47, %v146_v50 }
  0x3f   :  { %329 = vperm.xlu0 %432, %v318_v44   ;;  %v320_v44 = vld [vmem:[#allocation2 + $0xe] sm:$0x1]  ;;  %v271_v34 = vsel %vm106_vm4, %v270_v14, %v269_v13 }
  0x40   :  { %v340_v63 = vrot.slane %v320_v44, 7 }
  0x41   :  { %370 = vperm.xlu1 %433, %v359_v45   ;;  %v180_v45 = vrot.slane %v158_v25, 5  ;;  %v302_v25 = vsel %vm91_vm15, %v301_v52, %v300_v8  ;;  %v227_v52 = vrot.slane %v202_v32, 2  ;;  %v387_v8 = vrot.slane %v364_v48, 4  ;;  %v367_v32 = vld [vmem:[#allocation2 + $0x3f] sm:$0x1] }
  0x42   :  { %v341_v23 = vsel %vm88_vm14, %v340_v63, %v319_v6  ;;  %v226_v63 = vsel %vm100_vm2, %v225_v33, %v224_v42  ;;  %v391_v33 = vrot.slane %v366_v20, 2  ;;  %v393_v42 = vrot.slane %v367_v32, 1 }
  0x43   :  { %v181_v7 = vsel %vm94_vm0, %v180_v45, %v179_v51  ;;  %v343_v43 = vsel %vm91_vm15, %v342_v15, %v341_v23  ;;  %v203_v51 = vld [vmem:[#allocation2 + $0x3b] sm:$0x1]  ;;  %v309_v15 = vrot.slane %v284_v61, 2  ;;  %v228_v16 = vsel %vm103_vm3, %v227_v52, %v226_v63 }
  0x44   :  { %v183_v24 = vsel %vm97_vm1, %v182_v46, %v181_v7  ;;  %v304_v46 = vsel %vm94_vm0, %v303_v21, %v302_v25  ;;  %v345_v1 = vsel %vm94_vm0, %v344_v35, %v343_v43  ;;  %v365_v7 = vld [vmem:[#allocation2 + $0x2f] sm:$0x1]  ;;  %v229_v10 = vrot.slane %v203_v51, 1 }
  0x45   :  { %v185_v44 = vsel %vm100_vm2, %v184_v19, %v183_v24  ;;  %v306_v6 = vsel %vm97_vm1, %v305_v41, %v304_v46  ;;  %v347_v40 = vsel %vm97_vm1, %v346_v54, %v345_v1  ;;  %v389_v21 = vrot.slane %v365_v7, 3  ;;  %v326_v24 = vld [vmem:[#allocation2 + $0x3e] sm:$0x1] }
  0x46   :  { %v187_v5 = vsel %vm103_vm3, %v186_v38, %v185_v44  ;;  %v308_v18 = vsel %vm100_vm2, %v307_v62, %v306_v6  ;;  %v350_v25 = vrot.slane %v325_v11, 2  ;;  %v388_v26 = vsel %vm97_vm1, %v387_v8, %v386_v56 }
  0x47   :  { %v189_v17 = vsel %vm106_vm4, %v188_v60, %v187_v5  ;;  %v230_v28 = vsel %vm106_vm4, %v229_v10, %v228_v16  ;;  %v349_v57 = vsel %vm100_vm2, %v348_v12, %v347_v40  ;;  %v310_v0 = vsel %vm103_vm3, %v309_v15, %v308_v18 }
  0x48   :  { %v390_v35 = vsel %vm100_vm2, %v389_v21, %v388_v26  ;;  %v351_v38 = vsel %vm103_vm3, %v350_v25, %v349_v57  ;;  %v312_v39 = vsel %vm106_vm4, %v311_v27, %v310_v0 }
  0x8b   :  { %v248_v59 = vpop.permute.xlu2 %247 }
  0x8c   :  { %v273_v43 = vmul.f32 %v271_v34, %v248_v59 }
  0x93   :  { %v289_v41 = vpop.permute.xlu2 %288 }
  0x94   :  { %v314_v48 = vmul.f32 %v312_v39, %v289_v41 }
  0xa1   :  { %v77_v30 = vpop.permute.xlu0 %76 }
  0xa2   :  { %v109_v22 = vmul.f32 %v107_v4, %v77_v30  ;;  %v352_v30 = vrot.slane %v326_v24, 1 }
  0xa3   :  { %v166_v45 = vpop.permute.xlu1 %165 }
  0xa4   :  { %v191_v3 = vmul.f32 %v189_v17, %v166_v45  ;;  %v392_v45 = vsel %vm103_vm3, %v391_v33, %v390_v35  ;;  %v353_v46 = vsel %vm106_vm4, %v352_v30, %v351_v38 }
  0xa5   :  { %v394_v50 = vsel %vm106_vm4, %v393_v42, %v392_v45 }
  0xa9   :  { %v125_v19 = vpop.permute.xlu0 %124 }
  0xaa   :  { %v150_v23 = vmul.f32 %v148_v9, %v125_v19 }
  0xab   :  { %v207_v29 = vpop.permute.xlu1 %206 }
  0xac   :  { %v151_v31 = vadd.f32 %v150_v23, %v109_v22  ;;  %v232_v37 = vmul.f32 %v230_v28, %v207_v29 }
  0xae   :  { %v192_v36 = vadd.f32 %v191_v3, %v151_v31 }
  0xb0   :  { %v233_v44 = vadd.f32 %v232_v37, %v192_v36 }
  0xb1   :  { %v330_v47 = vpop.permute.xlu0 %329 }
  0xb2   :  { %v274_v49 = vadd.f32 %v273_v43, %v233_v44  ;;  %v355_v53 = vmul.f32 %v353_v46, %v330_v47 }
  0xb3   :  { %v371_v51 = vpop.permute.xlu1 %370 }
  0xb4   :  { %v315_v52 = vadd.f32 %v314_v48, %v274_v49  ;;  %v396_v55 = vmul.f32 %v394_v50, %v371_v51 }
  0xb6   :  { %v356_v54 = vadd.f32 %v355_v53, %v315_v52 }
  0xb8   :  { %v397_v58 = vadd.f32 %v396_v55, %v356_v54 }
  0xba   :  { %399 = vst.msk [vmem:[#allocation5] sm:$0xff] %vm398_vm5, %v397_v58 }
  0xbb   :  { %410 = dma.vmem_to_hbm [thread:$0]  %s406_s1, 128, %s408_s20, [#allocation4]  }
  0xbc   :  { %493 = dma.done.wait [#allocation4], 128  }
  0xbd   :  { %494 = vsyncadd [#allocation4], 4294967168 }
  0xbe   :  { %415 = vsyncpa [#allocation3], 1 }
  0xbf   :  { %416 = vsyncpa [#allocation4], 1 }

</bundles_post_ra>
